<compile_context>
chip_gen: v7x
topology: tpu7x:2x2x1
jax: 0.10.0
libtpu: 0.0.40
codegen_flags: <defaults>
</compile_context>

<pallas_src>
import functools

import jax
import jax.numpy as jnp
from jax.experimental import pallas as pl
from jax.experimental.pallas import tpu as pltpu


# ----------------------------------------------------------------------------
# tiling helpers
# ----------------------------------------------------------------------------
def _pick_row_tile(n):
    """Largest preferred row tile that divides n and keeps grid >= 2."""
    for t in (1024, 512, 256, 128, 64, 32, 16, 8):
        if n % t == 0 and n // t >= 2:
            return t
    return n  # fall back to a single full block


def _pick_mode_block(m):
    for t in (16, 8, 4, 2):
        if m % t == 0 and m // t >= 2:
            return t
    return m


_PARALLEL_1D = pltpu.CompilerParams(dimension_semantics=("parallel",))


# ----------------------------------------------------------------------------
# fc0: (N,3) -> (N,width) on the VPU (no K=3 MXU matmul)
# ----------------------------------------------------------------------------
def _fc0_kernel(x_ref, w_ref, b_ref, o_ref):
    x = x_ref[...]                       # (TN, 3)
    w = w_ref[...]                       # (3, C)
    y = (b_ref[...]
         + x[:, 0:1] * w[0:1, :]
         + x[:, 1:2] * w[1:2, :]
         + x[:, 2:3] * w[2:3, :])
    o_ref[...] = y.astype(o_ref.dtype)


def fc0_lift(x, w, b):
    N, _ = x.shape
    C = w.shape[1]
    tn = _pick_row_tile(N)
    return pl.pallas_call(
        _fc0_kernel,
        out_shape=jax.ShapeDtypeStruct((N, C), jnp.float32),
        grid=(N // tn,),
        in_specs=[
            pl.BlockSpec((tn, 3), lambda i: (i, 0)),
            pl.BlockSpec((3, C), lambda i: (0, 0)),
            pl.BlockSpec((1, C), lambda i: (0, 0)),
        ],
        out_specs=pl.BlockSpec((tn, C), lambda i: (i, 0)),
        compiler_params=_PARALLEL_1D,
    )(x, w, b.reshape(1, C))


# ----------------------------------------------------------------------------
# fused per-layer pointwise path:  z = x1 + h @ w + b   (+ per-tile BN stats)
# ----------------------------------------------------------------------------
def _linear_add_stats_kernel(h_ref, x1_ref, w_ref, b_ref, z_ref, ps_ref):
    z = (x1_ref[...]
         + jnp.dot(h_ref[...], w_ref[...], preferred_element_type=jnp.float32)
         + b_ref[...])
    z_ref[...] = z.astype(z_ref.dtype)
    s1 = jnp.sum(z, axis=0, keepdims=True)          # (1, C)
    s2 = jnp.sum(z * z, axis=0, keepdims=True)      # (1, C)
    ps_ref[...] = jnp.concatenate([s1, s2], axis=0)  # (2, C) partial stats


def linear_add_stats(h, x1, w, b):
    """Returns z = x1 + h@w + b (N,C) and channel stats [sum, sum_sq] (2,C)."""
    N, C = h.shape
    tn = _pick_row_tile(N)
    nt = N // tn
    z, partial = pl.pallas_call(
        _linear_add_stats_kernel,
        out_shape=(jax.ShapeDtypeStruct((N, C), jnp.float32),
                   jax.ShapeDtypeStruct((nt, 2, C), jnp.float32)),
        grid=(nt,),
        in_specs=[
            pl.BlockSpec((tn, C), lambda i: (i, 0)),
            pl.BlockSpec((tn, C), lambda i: (i, 0)),
            pl.BlockSpec((C, C), lambda i: (0, 0)),
            pl.BlockSpec((1, C), lambda i: (0, 0)),
        ],
        out_specs=(pl.BlockSpec((tn, C), lambda i: (i, 0)),
                   pl.BlockSpec((None, 2, C), lambda i: (i, 0, 0))),
        compiler_params=_PARALLEL_1D,
    )(h, x1, w, b.reshape(1, C))
    stats = jnp.sum(partial, axis=0)     # tiny (nt,2,C) -> (2,C) cross-tile reduce
    return z, stats


# ----------------------------------------------------------------------------
# BatchNorm apply (+ optional ReLU), tiled over N
# ----------------------------------------------------------------------------
def _bn_act_kernel(z_ref, s_ref, g_ref, bb_ref, o_ref, *, apply_relu, eps, inv_n):
    mean = s_ref[0:1, :] * inv_n
    var = s_ref[1:2, :] * inv_n - mean * mean        # biased batch variance
    scale = g_ref[...] * jax.lax.rsqrt(var + eps)
    y = (z_ref[...] - mean) * scale + bb_ref[...]
    if apply_relu:
        y = jnp.maximum(y, 0.0)
    o_ref[...] = y.astype(o_ref.dtype)


def bn_apply(z, stats, gamma, beta, apply_relu, eps=1e-5):
    N, C = z.shape
    tn = _pick_row_tile(N)
    return pl.pallas_call(
        functools.partial(_bn_act_kernel, apply_relu=apply_relu, eps=eps,
                          inv_n=1.0 / float(N)),
        out_shape=jax.ShapeDtypeStruct((N, C), jnp.float32),
        grid=(N // tn,),
        in_specs=[
            pl.BlockSpec((tn, C), lambda i: (i, 0)),
            pl.BlockSpec((2, C), lambda i: (0, 0)),
            pl.BlockSpec((1, C), lambda i: (0, 0)),
            pl.BlockSpec((1, C), lambda i: (0, 0)),
        ],
        out_specs=pl.BlockSpec((tn, C), lambda i: (i, 0)),
        compiler_params=_PARALLEL_1D,
    )(z, stats, gamma.reshape(1, C), beta.reshape(1, C))


# ----------------------------------------------------------------------------
# fused head: BN (layer 3, no ReLU) -> fc1 -> ReLU -> fc2
# ----------------------------------------------------------------------------
def _bn_head_kernel(z_ref, s_ref, g_ref, bb_ref, w1_ref, b1_ref, w2_ref, b2_ref,
                    o_ref, *, eps, inv_n):
    mean = s_ref[0:1, :] * inv_n
    var = s_ref[1:2, :] * inv_n - mean * mean
    y = (z_ref[...] - mean) * (g_ref[...] * jax.lax.rsqrt(var + eps)) + bb_ref[...]
    t = jnp.dot(y, w1_ref[...], preferred_element_type=jnp.float32) + b1_ref[...]
    t = jnp.maximum(t, 0.0)                                  # (TN, 128) stays in VMEM
    out = jnp.sum(t * w2_ref[...], axis=-1, keepdims=True) + b2_ref[...]
    o_ref[...] = out.astype(o_ref.dtype)


def bn_head(z, stats, gamma, beta, w1, b1, w2, b2, eps=1e-5):
    N, C = z.shape
    Hh = w1.shape[1]
    tn = _pick_row_tile(N)
    return pl.pallas_call(
        functools.partial(_bn_head_kernel, eps=eps, inv_n=1.0 / float(N)),
        out_shape=jax.ShapeDtypeStruct((N, 1), jnp.float32),
        grid=(N // tn,),
        in_specs=[
            pl.BlockSpec((tn, C), lambda i: (i, 0)),
            pl.BlockSpec((2, C), lambda i: (0, 0)),
            pl.BlockSpec((1, C), lambda i: (0, 0)),
            pl.BlockSpec((1, C), lambda i: (0, 0)),
            pl.BlockSpec((C, Hh), lambda i: (0, 0)),
            pl.BlockSpec((1, Hh), lambda i: (0, 0)),
            pl.BlockSpec((1, Hh), lambda i: (0, 0)),
            pl.BlockSpec((1, 1), lambda i: (0, 0)),
        ],
        out_specs=pl.BlockSpec((tn, 1), lambda i: (i, 0)),
        compiler_params=_PARALLEL_1D,
    )(z, stats, gamma.reshape(1, C), beta.reshape(1, C),
      w1, b1.reshape(1, Hh), w2.reshape(1, Hh), b2.reshape(1, 1))


# ----------------------------------------------------------------------------
# blocked complex channel-mix over Fourier modes (Karatsuba 3-multiply)
# ----------------------------------------------------------------------------
def _cmul_kernel(ar_ref, ai_ref, wr_ref, wi_ref, or_ref, oi_ref):
    ar = ar_ref[...]
    ai = ai_ref[...]
    wr = wr_ref[...]
    wi = wi_ref[...]
    k1 = jnp.einsum('mbi,mio->mbo', ar + ai, wr,
                    preferred_element_type=jnp.float32)
    k2 = jnp.einsum('mbi,mio->mbo', ar, wi - wr,
                    preferred_element_type=jnp.float32)
    k3 = jnp.einsum('mbi,mio->mbo', ai, wr + wi,
                    preferred_element_type=jnp.float32)
    or_ref[...] = k1 - k3
    oi_ref[...] = k1 + k2


def compl_mul_modes(ar, ai, wr, wi):
    """ar/ai: (M, B, I), wr/wi: (M, I, O) -> (M, B, O) real/imag parts."""
    M, B, I = ar.shape
    O = wr.shape[2]
    mb = _pick_mode_block(M)
    return pl.pallas_call(
        _cmul_kernel,
        out_shape=(jax.ShapeDtypeStruct((M, B, O), jnp.float32),
                   jax.ShapeDtypeStruct((M, B, O), jnp.float32)),
        grid=(M // mb,),
        in_specs=[
            pl.BlockSpec((mb, B, I), lambda m: (m, 0, 0)),
            pl.BlockSpec((mb, B, I), lambda m: (m, 0, 0)),
            pl.BlockSpec((mb, I, O), lambda m: (m, 0, 0)),
            pl.BlockSpec((mb, I, O), lambda m: (m, 0, 0)),
        ],
        out_specs=(pl.BlockSpec((mb, B, O), lambda m: (m, 0, 0)),
                   pl.BlockSpec((mb, B, O), lambda m: (m, 0, 0))),
        compiler_params=_PARALLEL_1D,
    )(ar, ai, wr, wi)


# ----------------------------------------------------------------------------
# SpectralConv2d (FFT glue in JAX, complex channel-mix in Pallas)
# ----------------------------------------------------------------------------
def spectral_conv2d(x, w1, w2, m1, m2):
    """x: (B, H, W, C) real.  w1/w2: (I, O, m1, m2, 2).  Returns (B, H, W, O)."""
    B, H, Wd, C = x.shape
    O = w1.shape[1]
    # TODO(synk): no Pallas FFT primitive; torch.rfft/irfft(normalized=True) == ortho rfft2/irfft2.
    x_ft = jnp.fft.rfft2(x, axes=(1, 2), norm="ortho")          # (B, H, W//2+1, C)

    M = 2 * m1 * m2
    a = jnp.concatenate([x_ft[:, :m1, :m2, :], x_ft[:, H - m1:, :m2, :]], axis=1)
    a = a.reshape(B, M, C)                                       # (B, M, C)
    ar = jnp.transpose(jnp.real(a), (1, 0, 2)).astype(jnp.float32)   # (M, B, C)
    ai = jnp.transpose(jnp.imag(a), (1, 0, 2)).astype(jnp.float32)

    w = jnp.concatenate([w1, w2], axis=2)                        # (I, O, 2*m1, m2, 2)
    wr = jnp.transpose(w[..., 0], (2, 3, 0, 1)).reshape(M, C, O)
    wi = jnp.transpose(w[..., 1], (2, 3, 0, 1)).reshape(M, C, O)

    o_re, o_im = compl_mul_modes(ar, ai, wr, wi)                 # (M, B, O) each
    o = (o_re + 1j * o_im).reshape(2 * m1, m2, B, O)
    o = jnp.transpose(o, (2, 0, 1, 3))                           # (B, 2*m1, m2, O)

    out_ft = jnp.zeros((B, H, Wd // 2 + 1, O), dtype=jnp.complex64)
    out_ft = out_ft.at[:, :m1, :m2, :].set(o[:, :m1])
    out_ft = out_ft.at[:, H - m1:, :m2, :].set(o[:, m1:])

    return jnp.fft.irfft2(out_ft, s=(H, Wd), axes=(1, 2), norm="ortho").astype(jnp.float32)


# ----------------------------------------------------------------------------
# Full Net2d forward
# ----------------------------------------------------------------------------
def net2d_forward(x, params, width, modes):
    B, H, Wd, _ = x.shape
    N = B * H * Wd
    flat = lambda t: t.reshape(N, t.shape[-1])
    unflat = lambda t: t.reshape(B, H, Wd, -1)

    # fc0: lift (a(x,y), x, y) -> width channels
    h = fc0_lift(flat(x), params["fc0_w"], params["fc0_b"])      # (N, width)

    out = None
    for l in range(4):
        x1 = spectral_conv2d(unflat(h), params[f"sw1_{l}"], params[f"sw2_{l}"],
                             modes, modes)
        # fused: x2 = h @ w + b ; z = x1 + x2 ; per-tile BN statistics
        z, stats = linear_add_stats(h, flat(x1),
                                    params[f"w_w_{l}"], params[f"w_b_{l}"])
        if l < 3:
            h = bn_apply(z, stats, params[f"bn_g_{l}"], params[f"bn_b_{l}"],
                         apply_relu=True)
        else:
            # bn3 (no ReLU) fused with fc1 + ReLU + fc2
            out = bn_head(z, stats, params[f"bn_g_{l}"], params[f"bn_b_{l}"],
                          params["fc1_w"], params["fc1_b"],
                          params["fc2_w"], params["fc2_b"])

    return jnp.squeeze(out.reshape(B, H, Wd, 1))  # matches reference x.squeeze()


# ----------------------------------------------------------------------------
# Deterministic parameter initialization (shapes follow the PyTorch __init__)
# ----------------------------------------------------------------------------
def init_params(key, width, modes):
    keys = jax.random.split(key, 32)
    u = lambda k, shape, s=0.1: (s * jax.random.uniform(k, shape)).astype(jnp.float32)
    p = {}
    p["fc0_w"] = u(keys[0], (3, width))
    p["fc0_b"] = u(keys[1], (width,))
    spec_scale = 1.0 / (width * width)
    for l in range(4):
        sub = jax.random.split(keys[2 + l], 4)
        p[f"sw1_{l}"] = (spec_scale *
                         jax.random.uniform(sub[0], (width, width, modes, modes, 2))).astype(jnp.float32)
        p[f"sw2_{l}"] = (spec_scale *
                         jax.random.uniform(sub[1], (width, width, modes, modes, 2))).astype(jnp.float32)
        # Conv1d(width, width, 1): weight (O, I, 1) -> stored transposed as (I, O)
        p[f"w_w_{l}"] = u(sub[2], (width, width))
        p[f"w_b_{l}"] = u(sub[3], (width,))
        p[f"bn_g_{l}"] = jnp.ones((width,), jnp.float32)
        p[f"bn_b_{l}"] = jnp.zeros((width,), jnp.float32)
    p["fc1_w"] = u(keys[10], (width, 128))
    p["fc1_b"] = u(keys[11], (128,))
    p["fc2_w"] = u(keys[12], (128, 1))
    p["fc2_b"] = u(keys[13], (1,))
    return p


# ----------------------------------------------------------------------------
if __name__ == "__main__":
    B, S, WIDTH, MODES = 2, 16, 32, 4   # small shapes; modes <= S//2+1

    key = jax.random.PRNGKey(0)
    k_params, k_x = jax.random.split(key)
    params = init_params(k_params, WIDTH, MODES)
    # input: (batch, x=S, y=S, c=3)  -> (a(x,y), x, y)
    x = jax.random.normal(k_x, (B, S, S, 3), dtype=jnp.float32)

    out = net2d_forward(x, params, WIDTH, MODES)
    out = jax.block_until_ready(out)
    assert out.shape == (B, S, S), out.shape
    assert jnp.all(jnp.isfinite(out))
    print("KERNEL_OK")
</pallas_src>

<mosaic_0001>
module attributes {stable_mosaic.version = 11 : i64} {
  func.func @_fc0_kernel(%arg0: i32, %arg1: memref<256x3xf32, #tpu.memory_space<vmem>>, %arg2: memref<3x32xf32, #tpu.memory_space<vmem>>, %arg3: memref<1x32xf32, #tpu.memory_space<vmem>>, %arg4: memref<256x32xf32, #tpu.memory_space<vmem>>) attributes {dimension_semantics = [#tpu.dimension_semantics<parallel>], iteration_bounds = array<i64: 2>, scalar_prefetch = 0 : i64, scratch_operands = 0 : i64, tpu.core_type = #tpu.core_type<tc>, window_params = [{transform_indices = @transform_0, window_bounds = array<i64: 256, 3>}, {pipeline_mode = #tpu.pipeline_mode<synchronous>, transform_indices = @transform_1, window_bounds = array<i64: 3, 32>}, {pipeline_mode = #tpu.pipeline_mode<synchronous>, transform_indices = @transform_2, window_bounds = array<i64: 1, 32>}, {transform_indices = @transform_3, window_bounds = array<i64: 256, 32>}]} {
    %c0 = arith.constant 0 : index
    %c0_0 = arith.constant 0 : index
    %0 = vector.load %arg1[%c0, %c0_0] : memref<256x3xf32, #tpu.memory_space<vmem>>, vector<256x3xf32>
    %c0_1 = arith.constant 0 : index
    %c0_2 = arith.constant 0 : index
    %1 = vector.load %arg2[%c0_1, %c0_2] : memref<3x32xf32, #tpu.memory_space<vmem>>, vector<3x32xf32>
    %c0_3 = arith.constant 0 : index
    %c0_4 = arith.constant 0 : index
    %2 = vector.load %arg3[%c0_3, %c0_4] : memref<1x32xf32, #tpu.memory_space<vmem>>, vector<1x32xf32>
    %3 = vector.extract_strided_slice %0 {offsets = [0, 0], sizes = [256, 1], strides = [1, 1]} : vector<256x3xf32> to vector<256x1xf32>
    %4 = vector.extract_strided_slice %1 {offsets = [0, 0], sizes = [1, 32], strides = [1, 1]} : vector<3x32xf32> to vector<1x32xf32>
    %5 = vector.broadcast %3 : vector<256x1xf32> to vector<256x32xf32>
    %6 = vector.broadcast %4 : vector<1x32xf32> to vector<256x32xf32>
    %7 = arith.mulf %5, %6 : vector<256x32xf32>
    %8 = vector.broadcast %2 : vector<1x32xf32> to vector<256x32xf32>
    %9 = arith.addf %8, %7 : vector<256x32xf32>
    %10 = vector.extract_strided_slice %0 {offsets = [0, 1], sizes = [256, 1], strides = [1, 1]} : vector<256x3xf32> to vector<256x1xf32>
    %11 = vector.extract_strided_slice %1 {offsets = [1, 0], sizes = [1, 32], strides = [1, 1]} : vector<3x32xf32> to vector<1x32xf32>
    %12 = vector.broadcast %10 : vector<256x1xf32> to vector<256x32xf32>
    %13 = vector.broadcast %11 : vector<1x32xf32> to vector<256x32xf32>
    %14 = arith.mulf %12, %13 : vector<256x32xf32>
    %15 = arith.addf %9, %14 : vector<256x32xf32>
    %16 = vector.extract_strided_slice %0 {offsets = [0, 2], sizes = [256, 1], strides = [1, 1]} : vector<256x3xf32> to vector<256x1xf32>
    %17 = vector.extract_strided_slice %1 {offsets = [2, 0], sizes = [1, 32], strides = [1, 1]} : vector<3x32xf32> to vector<1x32xf32>
    %18 = vector.broadcast %16 : vector<256x1xf32> to vector<256x32xf32>
    %19 = vector.broadcast %17 : vector<1x32xf32> to vector<256x32xf32>
    %20 = arith.mulf %18, %19 : vector<256x32xf32>
    %21 = arith.addf %15, %20 : vector<256x32xf32>
    %c0_5 = arith.constant 0 : index
    %c0_6 = arith.constant 0 : index
    %22 = vector.load %arg4[%c0_5, %c0_6] : memref<256x32xf32, #tpu.memory_space<vmem>>, vector<256x32xf32>
    tpu.vector_store %arg4[%c0_5, %c0_6], %21 {strides = array<i32>} : memref<256x32xf32, #tpu.memory_space<vmem>>, vector<256x32xf32>,
    return
  }
  func.func @transform_0(%arg0: i32) -> (i32, i32) {
    %c0_i32 = arith.constant 0 : i32
    %c0_i32_0 = arith.constant 0 : i32
    return %arg0, %c0_i32 : i32, i32
  }
  func.func @transform_1(%arg0: i32) -> (i32, i32) {
    %c0_i32 = arith.constant 0 : i32
    %c0_i32_0 = arith.constant 0 : i32
    %c0_i32_1 = arith.constant 0 : i32
    return %c0_i32, %c0_i32_0 : i32, i32
  }
  func.func @transform_2(%arg0: i32) -> (i32, i32) {
    %c0_i32 = arith.constant 0 : i32
    %c0_i32_0 = arith.constant 0 : i32
    %c0_i32_1 = arith.constant 0 : i32
    return %c0_i32, %c0_i32_0 : i32, i32
  }
  func.func @transform_3(%arg0: i32) -> (i32, i32) {
    %c0_i32 = arith.constant 0 : i32
    %c0_i32_0 = arith.constant 0 : i32
    return %arg0, %c0_i32 : i32, i32
  }
}

</mosaic_0001>

<bundles_post_ra>
// kernel: tpu_custom_call.1
= control target key start
LH: loop header
LB: loop body
LE: loop exit
PB: predicated region body
PF: predicated region fallthrough
CT: control target
= control target key end

     0   :  { %s983_s12 = smov 0   ;;  %s1611_s0 = inlined_call_operand.vmem [shape: f32[512,3], index: 0, kind: input, shape index: {}]   ;;  %s1612_s1 = inlined_call_operand.vmem [shape: f32[3,32], index: 1, kind: input, shape index: {}]   ;;  %s1613_s2 = inlined_call_operand.vmem [shape: f32[1,32], index: 2, kind: input, shape index: {}]   ;;  %s1614_s3 = inlined_call_operand.vmem [shape: f32[512,32], index: 3, kind: output, shape index: {}]  }
   0x1 LB: > { %s923_s13 = sadd.s32 4294967295, %s958_s12   ;;  %p927_p0 = scmp.ge.s32.totalorder %s958_s12, 1  ;;  %s958_s12 = sphi %s983_s12, %s13_s12  }
   0x2   : > { %p138_p1 = scmp.lt.s32.totalorder %s958_s12, 3 }
   0x4   : > { %p139_p2 = pnand %p927_p0, %p138_p1 }
   0x5   : > { %s928_s14 = sshll.u32 (!%p139_p2), %s923_s13, 5  ;;  %v960_v0 = vmov (!%p139_p2), 0   ;;  %v961_v33 = vmov (!%p139_p2), 1   ;;  %v962_v36 = vmov (!%p139_p2), 2   ;;  %v368_v59 = vlaneseq (!%p139_p2) }
   0x6   : > { %142 = sbr.rel (%p139_p2) target bundleno = 344 (0x158), region = 32  ;;  %947 = vset.pattern.permute.xlu1 (!%p139_p2), %v960_v0  ;;  %946 = vset.pattern.permute.xlu0 (!%p139_p2), %v960_v0  ;;  %p163_p3 = scmp.lt.s32.totalorder (!%p139_p2), %s928_s14, 63  ;;  %vm834_vm0 = vcmask (!%p139_p2), 261120  }
   0x7   : > { %v1237_v62 = vshrl.u32 (!%p139_p2), %v368_v59, 7 }
   0xd   : > { %s1616_s14 = smov (!%p163_p3, %s928_s14), 63 }
   0xe   : > { %s929_s15 = sshll.u32 %s1616_s14, 3 }
   0xf   : > { %s999_s18 = scalar_lea.vmem %s1611_s0, %s929_s15  ;;  %s1430_s25 = scalar_lea.vmem %s1614_s3, %s929_s15 }
  0x10   : > { %v1002_v1 = vld [vmem:[%s999_s18 + $0x10] sm:$0xff]  ;;  %v1005_v2 = vld [vmem:[%s999_s18] sm:$0xff]  ;;  %v1010_v3 = vld [vmem:[%s999_s18 + $0x18] sm:$0xff] }
  0x11   : > { %220 = vperm.xlu1 %947, %v1002_v1   ;;  %210 = vperm.xlu0 %946, %v1005_v2   ;;  %v1013_v4 = vld [vmem:[%s999_s18 + $0x8] sm:$0xff]  ;;  %v1021_v6 = vld [vmem:[%s999_s18 + $0x20] sm:$0xff]  ;;  %v1026_v7 = vld [vmem:[%s999_s18 + $0x38] sm:$0xff] }
  0x12   : > { %v1018_v5 = vld [vmem:[%s999_s18 + $0x28] sm:$0xff]  ;;  %v1029_v8 = vld [vmem:[%s999_s18 + $0x30] sm:$0xff]  ;;  %v1037_v10 = vld [vmem:[%s999_s18 + $0x40] sm:$0xff] }
  0x13   : > { %v1034_v9 = vld [vmem:[%s999_s18 + $0x48] sm:$0xff]  ;;  %v1042_v11 = vld [vmem:[%s999_s18 + $0x58] sm:$0xff]  ;;  %v1045_v12 = vld [vmem:[%s999_s18 + $0x50] sm:$0xff] }
  0x14   : > { %v1050_v13 = vld [vmem:[%s999_s18 + $0x68] sm:$0xff]  ;;  %v1053_v14 = vld [vmem:[%s999_s18 + $0x60] sm:$0xff]  ;;  %v1058_v15 = vld [vmem:[%s999_s18 + $0x78] sm:$0xff] }
  0x15   : > { %225 = vperm.xlu1 %947, %v1010_v3   ;;  %215 = vperm.xlu0 %946, %v1013_v4   ;;  %v1061_v16 = vld [vmem:[%s999_s18 + $0x70] sm:$0xff]  ;;  %v1066_v17 = vld [vmem:[%s999_s18 + $0x88] sm:$0xff]  ;;  %v1069_v18 = vld [vmem:[%s999_s18 + $0x80] sm:$0xff] }
  0x16   : > { %v1074_v19 = vld [vmem:[%s999_s18 + $0x98] sm:$0xff]  ;;  %v1077_v20 = vld [vmem:[%s999_s18 + $0x90] sm:$0xff]  ;;  %v1082_v21 = vld [vmem:[%s999_s18 + $0xa8] sm:$0xff] }
  0x17   : > { %v1085_v22 = vld [vmem:[%s999_s18 + $0xa0] sm:$0xff]  ;;  %v1090_v23 = vld [vmem:[%s999_s18 + $0xb8] sm:$0xff]  ;;  %v1093_v24 = vld [vmem:[%s999_s18 + $0xb0] sm:$0xff] }
  0x18   : > { %v1098_v25 = vld [vmem:[%s999_s18 + $0xc8] sm:$0xff]  ;;  %v1101_v26 = vld [vmem:[%s999_s18 + $0xc0] sm:$0xff]  ;;  %v1106_v27 = vld [vmem:[%s999_s18 + $0xd8] sm:$0xff] }
  0x19   : > { %235 = vperm.xlu1 %947, %v1018_v5   ;;  %230 = vperm.xlu0 %946, %v1021_v6   ;;  %v1109_v28 = vld [vmem:[%s999_s18 + $0xd0] sm:$0xff]  ;;  %v1114_v29 = vld [vmem:[%s999_s18 + $0xe8] sm:$0xff]  ;;  %v1117_v30 = vld [vmem:[%s999_s18 + $0xe0] sm:$0xff] }
  0x1a   : > { %v1122_v31 = vld [vmem:[%s999_s18 + $0xf8] sm:$0xff]  ;;  %v1125_v32 = vld [vmem:[%s999_s18 + $0xf0] sm:$0xff] }
  0x1d   : > { %245 = vperm.xlu1 %947, %v1026_v7   ;;  %240 = vperm.xlu0 %946, %v1029_v8  }
  0x21   : > { %255 = vperm.xlu1 %947, %v1034_v9   ;;  %250 = vperm.xlu0 %946, %v1037_v10  }
  0x25   : > { %265 = vperm.xlu1 %947, %v1042_v11   ;;  %260 = vperm.xlu0 %946, %v1045_v12  }
  0x29   : > { %275 = vperm.xlu1 %947, %v1050_v13   ;;  %270 = vperm.xlu0 %946, %v1053_v14  }
  0x2d   : > { %285 = vperm.xlu1 %947, %v1058_v15   ;;  %280 = vperm.xlu0 %946, %v1061_v16  }
  0x31   : > { %295 = vperm.xlu1 %947, %v1066_v17   ;;  %290 = vperm.xlu0 %946, %v1069_v18  }
  0x35   : > { %305 = vperm.xlu1 %947, %v1074_v19   ;;  %300 = vperm.xlu0 %946, %v1077_v20  }
  0x39   : > { %315 = vperm.xlu1 %947, %v1082_v21   ;;  %310 = vperm.xlu0 %946, %v1085_v22  }
  0x3d   : > { %325 = vperm.xlu1 %947, %v1090_v23   ;;  %320 = vperm.xlu0 %946, %v1093_v24  }
  0x41   : > { %335 = vperm.xlu1 %947, %v1098_v25   ;;  %330 = vperm.xlu0 %946, %v1101_v26  }
  0x45   : > { %345 = vperm.xlu1 %947, %v1106_v27   ;;  %340 = vperm.xlu0 %946, %v1109_v28  }
  0x49   : > { %355 = vperm.xlu1 %947, %v1114_v29   ;;  %350 = vperm.xlu0 %946, %v1117_v30  }
  0x4d   : > { %365 = vperm.xlu1 %947, %v1122_v31   ;;  %360 = vperm.xlu0 %946, %v1125_v32  }
  0x51   : > { %949 = vset.pattern.permute.xlu1 %v961_v33  ;;  %948 = vset.pattern.permute.xlu0 %v961_v33 }
  0x52   : > { %447 = vperm.xlu1 %949, %v1013_v4   ;;  %443 = vperm.xlu0 %948, %v1005_v2  }
  0x56   : > { %451 = vperm.xlu1 %949, %v1002_v1   ;;  %455 = vperm.xlu0 %948, %v1010_v3  }
  0x5a   : > { %459 = vperm.xlu1 %949, %v1021_v6   ;;  %463 = vperm.xlu0 %948, %v1018_v5  }
  0x5e   : > { %467 = vperm.xlu1 %949, %v1029_v8   ;;  %471 = vperm.xlu0 %948, %v1026_v7  }
  0x62   : > { %475 = vperm.xlu1 %949, %v1037_v10   ;;  %479 = vperm.xlu0 %948, %v1034_v9  }
  0x66   : > { %483 = vperm.xlu1 %949, %v1045_v12   ;;  %487 = vperm.xlu0 %948, %v1042_v11  }
  0x6a   : > { %491 = vperm.xlu1 %949, %v1053_v14   ;;  %495 = vperm.xlu0 %948, %v1050_v13  }
  0x6e   : > { %499 = vperm.xlu1 %949, %v1061_v16   ;;  %503 = vperm.xlu0 %948, %v1058_v15  }
  0x72   : > { %507 = vperm.xlu1 %949, %v1069_v18   ;;  %511 = vperm.xlu0 %948, %v1066_v17  }
  0x76   : > { %515 = vperm.xlu1 %949, %v1077_v20   ;;  %519 = vperm.xlu0 %948, %v1074_v19  }
  0x7a   : > { %523 = vperm.xlu1 %949, %v1085_v22   ;;  %527 = vperm.xlu0 %948, %v1082_v21  }
  0x7e   : > { %531 = vperm.xlu1 %949, %v1093_v24   ;;  %535 = vperm.xlu0 %948, %v1090_v23  }
  0x82   : > { %539 = vperm.xlu1 %949, %v1101_v26   ;;  %543 = vperm.xlu0 %948, %v1098_v25  }
  0x86   : > { %547 = vperm.xlu1 %949, %v1109_v28   ;;  %551 = vperm.xlu0 %948, %v1106_v27  }
  0x8a   : > { %555 = vperm.xlu1 %949, %v1117_v30   ;;  %559 = vperm.xlu0 %948, %v1114_v29  }
  0x8e   : > { %563 = vperm.xlu1 %949, %v1125_v32   ;;  %567 = vperm.xlu0 %948, %v1122_v31  }
  0x90   : > { %v1161_v34 = vpop.permute.xlu1 %220  ;;  %v1163_v35 = vpop.permute.xlu0 %210 }
  0x92   : > { %950 = vset.pattern.permute.xlu1 %v962_v36  ;;  %951 = vset.pattern.permute.xlu0 %v962_v36 }
  0x93   : > { %639 = vperm.xlu1 %950, %v1005_v2   ;;  %643 = vperm.xlu0 %951, %v1013_v4   ;;  %v1251_v2 = vld [vmem:[%s1612_s1] sm:$0x7] }
  0x94   : > { %v1167_v37 = vpop.permute.xlu1 %225  ;;  %v1169_v38 = vpop.permute.xlu0 %215 }
  0x97   : > { %647 = vperm.xlu1 %950, %v1002_v1   ;;  %655 = vperm.xlu0 %951, %v1021_v6   ;;  %v370_v1 = vsub.s32 0, %v1237_v62 }
  0x98   : > { %v1173_v39 = vpop.permute.xlu1 %235  ;;  %v1175_v40 = vpop.permute.xlu0 %230 }
  0x9b   : > { %651 = vperm.xlu1 %950, %v1010_v3   ;;  %663 = vperm.xlu0 %951, %v1029_v8  }
  0x9c   : > { %v1179_v41 = vpop.permute.xlu1 %245  ;;  %v1181_v42 = vpop.permute.xlu0 %240 }
  0x9f   : > { %659 = vperm.xlu1 %950, %v1018_v5   ;;  %671 = vperm.xlu0 %951, %v1037_v10   ;;  %v1258_v5 = vrot.slane %v1251_v2, %v370_v1 }
  0xa0   : > { %v1185_v43 = vpop.permute.xlu1 %255  ;;  %v1187_v44 = vpop.permute.xlu0 %250 }
  0xa3   : > { %667 = vperm.xlu1 %950, %v1026_v7   ;;  %679 = vperm.xlu0 %951, %v1045_v12  }
  0xa4   : > { %v1191_v45 = vpop.permute.xlu1 %265  ;;  %v1193_v46 = vpop.permute.xlu0 %260 }
  0xa7   : > { %675 = vperm.xlu1 %950, %v1034_v9   ;;  %687 = vperm.xlu0 %951, %v1053_v14   ;;  %v1268_v9 = vld [vmem:[%s1613_s2] ss:$0 sm:$0xff]  ;;  %v375_v14 = vmul.f32 %v1258_v5, %v1167_v37 }
  0xa8   : > { %v1197_v47 = vpop.permute.xlu1 %275  ;;  %v1199_v48 = vpop.permute.xlu0 %270 }
  0xab   : > { %683 = vperm.xlu1 %950, %v1042_v11   ;;  %695 = vperm.xlu0 %951, %v1061_v16   ;;  %v572_v11 = vsub.s32 1, %v1237_v62 }
  0xac   : > { %v1203_v49 = vpop.permute.xlu1 %285  ;;  %v1205_v50 = vpop.permute.xlu0 %280 }
  0xaf   : > { %691 = vperm.xlu1 %950, %v1050_v13   ;;  %703 = vperm.xlu0 %951, %v1069_v18   ;;  %v413_v18 = vadd.f32 %v1268_v9, %v375_v14 }
  0xb0   : > { %v1209_v51 = vpop.permute.xlu1 %295  ;;  %v1211_v52 = vpop.permute.xlu0 %290 }
  0xb3   : > { %699 = vperm.xlu1 %950, %v1058_v15   ;;  %711 = vperm.xlu0 %951, %v1077_v20   ;;  %v1283_v15 = vrot.slane %v1251_v2, %v572_v11  ;;  %v385_v11 = vmul.f32 %v1258_v5, %v1197_v47 }
  0xb4   : > { %v1215_v53 = vpop.permute.xlu1 %305  ;;  %v1217_v54 = vpop.permute.xlu0 %300 }
  0xb7   : > { %707 = vperm.xlu1 %950, %v1066_v17   ;;  %719 = vperm.xlu0 %951, %v1085_v22  }
  0xb8   : > { %v1221_v55 = vpop.permute.xlu1 %315  ;;  %v1223_v56 = vpop.permute.xlu0 %310 }
  0xbb   : > { %715 = vperm.xlu1 %950, %v1074_v19   ;;  %727 = vperm.xlu0 %951, %v1093_v24   ;;  %v377_v19 = vmul.f32 %v1258_v5, %v1173_v39 }
  0xbc   : > { %v1227_v57 = vpop.permute.xlu1 %325  ;;  %v1229_v58 = vpop.permute.xlu0 %320 }
  0xbd   : > { %v415_v24 = vadd.f32 %v1268_v9, %v377_v19 }
  0xbf   : > { %723 = vperm.xlu1 %950, %v1082_v21   ;;  %735 = vperm.xlu0 %951, %v1101_v26  }
  0xc0   : > { %v1233_v60 = vpop.permute.xlu1 %335  ;;  %v1235_v61 = vpop.permute.xlu0 %330 }
  0xc3   : > { %731 = vperm.xlu1 %950, %v1090_v23   ;;  %743 = vperm.xlu0 %951, %v1109_v28  }
  0xc4   : > { %v1241_v63 = vpop.permute.xlu1 %345  ;;  %v1243_v0 = vpop.permute.xlu0 %340 }
  0xc7   : > { %739 = vperm.xlu1 %950, %v1098_v25   ;;  %751 = vperm.xlu0 %951, %v1117_v30   ;;  %v379_v25 = vmul.f32 %v1258_v5, %v1179_v41  ;;  %v383_v41 = vmul.f32 %v1258_v5, %v1191_v45  ;;  %v423_v45 = vadd.f32 %v1268_v9, %v385_v11 }
  0xc8   : > { %v1253_v3 = vpop.permute.xlu1 %355  ;;  %v1255_v4 = vpop.permute.xlu0 %350  ;;  %v393_v11 = vmul.f32 %v1258_v5, %v1221_v55 }
  0xc9   : > { %v417_v30 = vadd.f32 %v1268_v9, %v379_v25 }
  0xcb   : > { %747 = vperm.xlu1 %950, %v1106_v27   ;;  %759 = vperm.xlu0 %951, %v1125_v32  }
  0xcc   : > { %v366_v6 = vpop.permute.xlu1 %365  ;;  %v1262_v7 = vpop.permute.xlu0 %360 }
  0xcd   : > { %v403_v8 = vmul.f32 %v1258_v5, %v366_v6 }
  0xcf   : > { %v1271_v10 = vadd.f32 %v1268_v9, %v403_v8  ;;  %755 = vperm.xlu1 %950, %v1114_v29  }
  0xd1   : > { %v1275_v12 = vpop.permute.xlu1 %447  ;;  %v1277_v13 = vpop.permute.xlu0 %443 }
  0xd3   : > { %763 = vperm.xlu1 %950, %v1122_v31   ;;  %v381_v31 = vmul.f32 %v1258_v5, %v1185_v43  ;;  %v421_v43 = vadd.f32 %v1268_v9, %v383_v41 }
  0xd5   : > { %v1285_v16 = vpop.permute.xlu1 %451  ;;  %v456_v17 = vpop.permute.xlu0 %455  ;;  %v419_v39 = vadd.f32 %v1268_v9, %v381_v31 }
  0xd6   : > { %v577_v20 = vmul.f32 %v1283_v15, %v456_v17 }
  0xd8   : > { %v1291_v21 = vadd.f32 %v577_v20, %v413_v18  ;;  %v387_v20 = vmul.f32 %v1258_v5, %v1203_v49 }
  0xd9   : > { %v1293_v22 = vpop.permute.xlu1 %459  ;;  %v464_v23 = vpop.permute.xlu0 %463 }
  0xda   : > { %v579_v26 = vmul.f32 %v1283_v15, %v464_v23  ;;  %v425_v47 = vadd.f32 %v1268_v9, %v387_v20 }
  0xdc   : > { %v1299_v27 = vadd.f32 %v579_v26, %v415_v24 }
  0xdd   : > { %v1301_v28 = vpop.permute.xlu1 %467  ;;  %v472_v29 = vpop.permute.xlu0 %471 }
  0xde   : > { %v581_v32 = vmul.f32 %v1283_v15, %v472_v29  ;;  %v389_v29 = vmul.f32 %v1258_v5, %v1209_v51 }
  0xe0   : > { %v1307_v33 = vadd.f32 %v581_v32, %v417_v30  ;;  %v427_v49 = vadd.f32 %v1268_v9, %v389_v29 }
  0xe1   : > { %v1309_v36 = vpop.permute.xlu1 %475  ;;  %v480_v37 = vpop.permute.xlu0 %479 }
  0xe2   : > { %v583_v59 = vmul.f32 %v1283_v15, %v480_v37 }
  0xe4   : > { %v1315_v1 = vadd.f32 %v583_v59, %v419_v39  ;;  %v391_v39 = vmul.f32 %v1258_v5, %v1215_v53  ;;  %v431_v53 = vadd.f32 %v1268_v9, %v393_v11 }
  0xe5   : > { %v1317_v6 = vpop.permute.xlu1 %483  ;;  %v488_v8 = vpop.permute.xlu0 %487 }
  0xe6   : > { %v585_v14 = vmul.f32 %v1283_v15, %v488_v8  ;;  %v429_v51 = vadd.f32 %v1268_v9, %v391_v39 }
  0xe8   : > { %v1323_v17 = vadd.f32 %v585_v14, %v421_v43 }
  0xe9   : > { %v1325_v18 = vpop.permute.xlu1 %491  ;;  %v496_v19 = vpop.permute.xlu0 %495 }
  0xea   : > { %v587_v23 = vmul.f32 %v1283_v15, %v496_v19 }
  0xec   : > { %v1331_v24 = vadd.f32 %v587_v23, %v423_v45  ;;  %v395_v23 = vmul.f32 %v1258_v5, %v1227_v57 }
  0xed   : > { %v1333_v25 = vpop.permute.xlu1 %499  ;;  %v504_v26 = vpop.permute.xlu0 %503 }
  0xee   : > { %v589_v30 = vmul.f32 %v1283_v15, %v504_v26  ;;  %v433_v55 = vadd.f32 %v1268_v9, %v395_v23  ;;  %v401_v23 = vmul.f32 %v1258_v5, %v1253_v3  ;;  %v372_v3 = vmul.f32 %v1258_v5, %v1163_v35 }
  0xf0   : > { %v1339_v31 = vadd.f32 %v589_v30, %v425_v47 }
  0xf1   : > { %v1341_v32 = vpop.permute.xlu1 %507  ;;  %v512_v37 = vpop.permute.xlu0 %511 }
  0xf2   : > { %v591_v41 = vmul.f32 %v1283_v15, %v512_v37  ;;  %v397_v37 = vmul.f32 %v1258_v5, %v1233_v60 }
  0xf4   : > { %v1347_v59 = vadd.f32 %v591_v41, %v427_v49  ;;  %v435_v57 = vadd.f32 %v1268_v9, %v397_v37 }
  0xf5   : > { %v1349_v8 = vpop.permute.xlu1 %515  ;;  %v520_v43 = vpop.permute.xlu0 %519 }
  0xf6   : > { %v593_v14 = vmul.f32 %v1283_v15, %v520_v43 }
  0xf8   : > { %v1355_v19 = vadd.f32 %v593_v14, %v429_v51  ;;  %v399_v51 = vmul.f32 %v1258_v5, %v1241_v63  ;;  %v439_v63 = vadd.f32 %v1268_v9, %v401_v23 }
  0xf9   : > { %v1357_v45 = vpop.permute.xlu1 %523  ;;  %v528_v20 = vpop.permute.xlu0 %527 }
  0xfa   : > { %v595_v26 = vmul.f32 %v1283_v15, %v528_v20  ;;  %v437_v60 = vadd.f32 %v1268_v9, %v399_v51 }
  0xfc   : > { %v1363_v47 = vadd.f32 %v595_v26, %v431_v53 }
  0xfd   : > { %v1365_v29 = vpop.permute.xlu1 %531  ;;  %v536_v30 = vpop.permute.xlu0 %535 }
  0xfe   : > { %v597_v49 = vmul.f32 %v1283_v15, %v536_v30 }
 0x100   : > { %v1371_v39 = vadd.f32 %v597_v49, %v433_v55 }
 0x101   : > { %v1373_v41 = vpop.permute.xlu1 %539  ;;  %v544_v43 = vpop.permute.xlu0 %543 }
 0x102   : > { %v599_v11 = vmul.f32 %v1283_v15, %v544_v43  ;;  %v768_v43 = vsub.s32 2, %v1237_v62  ;;  %v574_v62 = vmul.f32 %v1283_v15, %v1277_v13  ;;  %v576_v13 = vmul.f32 %v1283_v15, %v1285_v16 }
 0x104   : > { %v1379_v14 = vadd.f32 %v599_v11, %v435_v57  ;;  %v373_v57 = vmul.f32 %v1258_v5, %v1169_v38  ;;  %v374_v38 = vmul.f32 %v1258_v5, %v1161_v34  ;;  %v578_v34 = vmul.f32 %v1283_v15, %v1293_v22 }
 0x105   : > { %v1381_v20 = vpop.permute.xlu1 %547  ;;  %v552_v53 = vpop.permute.xlu0 %551  ;;  %v378_v22 = vmul.f32 %v1258_v5, %v1181_v42 }
 0x106   : > { %v601_v26 = vmul.f32 %v1283_v15, %v552_v53  ;;  %v411_v35 = vadd.f32 %v1268_v9, %v373_v57 }
 0x107   : > { %v416_v42 = vadd.f32 %v1268_v9, %v378_v22 }
 0x108   : > { %v1387_v30 = vadd.f32 %v601_v26, %v437_v60  ;;  %v575_v60 = vmul.f32 %v1283_v15, %v1275_v12  ;;  %v1408_v26 = vrot.slane %v1251_v2, %v768_v43  ;;  %v376_v12 = vmul.f32 %v1258_v5, %v1175_v40 }
 0x109   : > { %v1389_v55 = vpop.permute.xlu1 %555  ;;  %v560_v37 = vpop.permute.xlu0 %559  ;;  %v412_v40 = vadd.f32 %v1268_v9, %v374_v38 }
 0x10a   : > { %v603_v49 = vmul.f32 %v1283_v15, %v560_v37  ;;  %v414_v16 = vadd.f32 %v1268_v9, %v376_v12 }
 0x10c   : > { %v1396_v51 = vadd.f32 %v603_v49, %v439_v63  ;;  %v410_v63 = vadd.f32 %v1268_v9, %v372_v3  ;;  %v607_v49 = vadd.f32 %v575_v60, %v411_v35 }
 0x10d   : > { %v1400_v11 = vpop.permute.xlu1 %563  ;;  %v568_v53 = vpop.permute.xlu0 %567 }
 0x10e   : > { %v605_v23 = vmul.f32 %v1283_v15, %v568_v53  ;;  %v606_v43 = vadd.f32 %v574_v62, %v410_v63  ;;  %v610_v63 = vadd.f32 %v578_v34, %v414_v16  ;;  %v382_v16 = vmul.f32 %v1258_v5, %v1193_v46 }
 0x110   : > { %v1414_v37 = vadd.f32 %v605_v23, %v1271_v10  ;;  %v608_v23 = vadd.f32 %v576_v13, %v412_v40  ;;  %v420_v46 = vadd.f32 %v1268_v9, %v382_v16 }
 0x112   : > { %v640_v53 = vpop.permute.xlu1 %639  ;;  %v644_v2 = vpop.permute.xlu0 %643 }
 0x113   : > { %v770_v57 = vmul.f32 %v1408_v26, %v640_v53  ;;  %v771_v10 = vmul.f32 %v1408_v26, %v644_v2  ;;  %v580_v53 = vmul.f32 %v1283_v15, %v1301_v28 }
 0x115   : > { %v802_v3 = vadd.f32 %v770_v57, %v606_v43  ;;  %v803_v60 = vadd.f32 %v771_v10, %v607_v49  ;;  %v380_v49 = vmul.f32 %v1258_v5, %v1187_v44  ;;  %v612_v28 = vadd.f32 %v580_v53, %v416_v42 }
 0x116   : > { %v648_v62 = vpop.permute.xlu1 %647  ;;  %v656_v35 = vpop.permute.xlu0 %655  ;;  %v582_v57 = vmul.f32 %v1283_v15, %v1309_v36 }
 0x117   : > { %835 = vst.msk [vmem:[%s1430_s25] sm:$0xff] %vm834_vm0, %v802_v3  ;;  %836 = vst.msk [vmem:[%s1430_s25 + $0x8] sm:$0xff] %vm834_vm0, %v803_v60  ;;  %v772_v38 = vmul.f32 %v1408_v26, %v648_v62  ;;  %v774_v12 = vmul.f32 %v1408_v26, %v656_v35  ;;  %v418_v44 = vadd.f32 %v1268_v9, %v380_v49 }
 0x118   : > { %v584_v62 = vmul.f32 %v1283_v15, %v1317_v6  ;;  %v586_v49 = vmul.f32 %v1283_v15, %v1325_v18 }
 0x119   : > { %v804_v13 = vadd.f32 %v772_v38, %v608_v23  ;;  %v806_v2 = vadd.f32 %v774_v12, %v610_v63  ;;  %v614_v36 = vadd.f32 %v582_v57, %v418_v44 }
 0x11a   : > { %v652_v43 = vpop.permute.xlu1 %651  ;;  %v664_v34 = vpop.permute.xlu0 %663  ;;  %v616_v6 = vadd.f32 %v584_v62, %v420_v46 }
 0x11b   : > { %837 = vst.msk [vmem:[%s1430_s25 + $0x10] sm:$0xff] %vm834_vm0, %v804_v13  ;;  %839 = vst.msk [vmem:[%s1430_s25 + $0x20] sm:$0xff] %vm834_vm0, %v806_v2  ;;  %v773_v10 = vmul.f32 %v1408_v26, %v652_v43  ;;  %v776_v40 = vmul.f32 %v1408_v26, %v664_v34 }
 0x11d   : > { %v805_v22 = vadd.f32 %v773_v10, %v1291_v21  ;;  %v808_v3 = vadd.f32 %v776_v40, %v612_v28  ;;  %v384_v21 = vmul.f32 %v1258_v5, %v1199_v48  ;;  %v588_v10 = vmul.f32 %v1283_v15, %v1333_v25 }
 0x11e   : > { %v660_v60 = vpop.permute.xlu1 %659  ;;  %v672_v23 = vpop.permute.xlu0 %671 }
 0x11f   : > { %838 = vst.msk [vmem:[%s1430_s25 + $0x18] sm:$0xff] %vm834_vm0, %v805_v22  ;;  %841 = vst.msk [vmem:[%s1430_s25 + $0x30] sm:$0xff] %vm834_vm0, %v808_v3  ;;  %v775_v35 = vmul.f32 %v1408_v26, %v660_v60  ;;  %v778_v63 = vmul.f32 %v1408_v26, %v672_v23  ;;  %v422_v48 = vadd.f32 %v1268_v9, %v384_v21 }
 0x120   : > { %v590_v23 = vmul.f32 %v1283_v15, %v1341_v32 }
 0x121   : > { %v807_v53 = vadd.f32 %v775_v35, %v1299_v27  ;;  %v810_v38 = vadd.f32 %v778_v63, %v614_v36  ;;  %v386_v27 = vmul.f32 %v1258_v5, %v1205_v50  ;;  %v618_v18 = vadd.f32 %v586_v49, %v422_v48 }
 0x122   : > { %v668_v12 = vpop.permute.xlu1 %667  ;;  %v680_v42 = vpop.permute.xlu0 %679 }
 0x123   : > { %840 = vst.msk [vmem:[%s1430_s25 + $0x28] sm:$0xff] %vm834_vm0, %v807_v53  ;;  %843 = vst.msk [vmem:[%s1430_s25 + $0x40] sm:$0xff] %vm834_vm0, %v810_v38  ;;  %v777_v13 = vmul.f32 %v1408_v26, %v668_v12  ;;  %v780_v2 = vmul.f32 %v1408_v26, %v680_v42  ;;  %v424_v50 = vadd.f32 %v1268_v9, %v386_v27 }
 0x124   : > { %v592_v53 = vmul.f32 %v1283_v15, %v1349_v8 }
 0x125   : > { %v809_v43 = vadd.f32 %v777_v13, %v1307_v33  ;;  %v812_v34 = vadd.f32 %v780_v2, %v616_v6  ;;  %v388_v33 = vmul.f32 %v1258_v5, %v1211_v52  ;;  %v620_v25 = vadd.f32 %v588_v10, %v424_v50 }
 0x126   : > { %v676_v28 = vpop.permute.xlu1 %675  ;;  %v688_v57 = vpop.permute.xlu0 %687  ;;  %v594_v2 = vmul.f32 %v1283_v15, %v1357_v45 }
 0x127   : > { %842 = vst.msk [vmem:[%s1430_s25 + $0x38] sm:$0xff] %vm834_vm0, %v809_v43  ;;  %845 = vst.msk [vmem:[%s1430_s25 + $0x50] sm:$0xff] %vm834_vm0, %v812_v34  ;;  %v779_v40 = vmul.f32 %v1408_v26, %v676_v28  ;;  %v782_v44 = vmul.f32 %v1408_v26, %v688_v57  ;;  %v426_v52 = vadd.f32 %v1268_v9, %v388_v33 }
 0x129   : > { %v811_v16 = vadd.f32 %v779_v40, %v1315_v1  ;;  %v814_v22 = vadd.f32 %v782_v44, %v618_v18  ;;  %v390_v1 = vmul.f32 %v1258_v5, %v1217_v54  ;;  %v622_v32 = vadd.f32 %v590_v23, %v426_v52 }
 0x12a   : > { %v684_v3 = vpop.permute.xlu1 %683  ;;  %v696_v60 = vpop.permute.xlu0 %695  ;;  %v596_v18 = vmul.f32 %v1283_v15, %v1365_v29  ;;  %v600_v52 = vmul.f32 %v1283_v15, %v1381_v20 }
 0x12b   : > { %844 = vst.msk [vmem:[%s1430_s25 + $0x48] sm:$0xff] %vm834_vm0, %v811_v16  ;;  %847 = vst.msk [vmem:[%s1430_s25 + $0x60] sm:$0xff] %vm834_vm0, %v814_v22  ;;  %v781_v36 = vmul.f32 %v1408_v26, %v684_v3  ;;  %v784_v62 = vmul.f32 %v1408_v26, %v696_v60  ;;  %v428_v54 = vadd.f32 %v1268_v9, %v390_v1 }
 0x12c   : > { %v598_v22 = vmul.f32 %v1283_v15, %v1373_v41 }
 0x12d   : > { %v813_v35 = vadd.f32 %v781_v36, %v1323_v17  ;;  %v816_v63 = vadd.f32 %v784_v62, %v620_v25  ;;  %v392_v17 = vmul.f32 %v1258_v5, %v1223_v56  ;;  %v624_v8 = vadd.f32 %v592_v53, %v428_v54 }
 0x12e   : > { %v692_v46 = vpop.permute.xlu1 %691  ;;  %v704_v21 = vpop.permute.xlu0 %703  ;;  %v602_v53 = vmul.f32 %v1283_v15, %v1389_v55 }
 0x12f   : > { %846 = vst.msk [vmem:[%s1430_s25 + $0x58] sm:$0xff] %vm834_vm0, %v813_v35  ;;  %849 = vst.msk [vmem:[%s1430_s25 + $0x70] sm:$0xff] %vm834_vm0, %v816_v63  ;;  %v783_v38 = vmul.f32 %v1408_v26, %v692_v46  ;;  %v786_v12 = vmul.f32 %v1408_v26, %v704_v21  ;;  %v430_v56 = vadd.f32 %v1268_v9, %v392_v17 }
 0x131   : > { %v815_v42 = vadd.f32 %v783_v38, %v1331_v24  ;;  %v818_v6 = vadd.f32 %v786_v12, %v622_v32  ;;  %v394_v24 = vmul.f32 %v1258_v5, %v1229_v58  ;;  %v626_v45 = vadd.f32 %v594_v2, %v430_v56 }
 0x132   : > { %v700_v49 = vpop.permute.xlu1 %699  ;;  %v712_v13 = vpop.permute.xlu0 %711 }
 0x133   : > { %848 = vst.msk [vmem:[%s1430_s25 + $0x68] sm:$0xff] %vm834_vm0, %v815_v42  ;;  %851 = vst.msk [vmem:[%s1430_s25 + $0x80] sm:$0xff] %vm834_vm0, %v818_v6  ;;  %v785_v48 = vmul.f32 %v1408_v26, %v700_v49  ;;  %v788_v27 = vmul.f32 %v1408_v26, %v712_v13  ;;  %v432_v58 = vadd.f32 %v1268_v9, %v394_v24 }
 0x134   : > { %v604_v49 = vmul.f32 %v1283_v15, %v1400_v11 }
 0x135   : > { %v817_v43 = vadd.f32 %v785_v48, %v1339_v31  ;;  %v820_v34 = vadd.f32 %v788_v27, %v624_v8  ;;  %v396_v31 = vmul.f32 %v1258_v5, %v1235_v61  ;;  %v628_v29 = vadd.f32 %v596_v18, %v432_v58 }
 0x136   : > { %v708_v28 = vpop.permute.xlu1 %707  ;;  %v720_v57 = vpop.permute.xlu0 %719 }
 0x137   : > { %850 = vst.msk [vmem:[%s1430_s25 + $0x78] sm:$0xff] %vm834_vm0, %v817_v43  ;;  %853 = vst.msk [vmem:[%s1430_s25 + $0x90] sm:$0xff] %vm834_vm0, %v820_v34  ;;  %v787_v10 = vmul.f32 %v1408_v26, %v708_v28  ;;  %v790_v40 = vmul.f32 %v1408_v26, %v720_v57  ;;  %v434_v61 = vadd.f32 %v1268_v9, %v396_v31 }
 0x139   : > { %v819_v44 = vadd.f32 %v787_v10, %v1347_v59  ;;  %v822_v50 = vadd.f32 %v790_v40, %v626_v45  ;;  %v398_v59 = vmul.f32 %v1258_v5, %v1243_v0  ;;  %v630_v41 = vadd.f32 %v598_v22, %v434_v61 }
 0x13a   : > { %v716_v33 = vpop.permute.xlu1 %715  ;;  %v728_v16 = vpop.permute.xlu0 %727 }
 0x13b   : > { %852 = vst.msk [vmem:[%s1430_s25 + $0x88] sm:$0xff] %vm834_vm0, %v819_v44  ;;  %855 = vst.msk [vmem:[%s1430_s25 + $0xa0] sm:$0xff] %vm834_vm0, %v822_v50  ;;  %v789_v3 = vmul.f32 %v1408_v26, %v716_v33  ;;  %v792_v60 = vmul.f32 %v1408_v26, %v728_v16  ;;  %v436_v0 = vadd.f32 %v1268_v9, %v398_v59 }
 0x13d   : > { %v821_v25 = vadd.f32 %v789_v3, %v1355_v19  ;;  %v824_v23 = vadd.f32 %v792_v60, %v628_v29  ;;  %v400_v19 = vmul.f32 %v1258_v5, %v1255_v4  ;;  %v632_v20 = vadd.f32 %v600_v52, %v436_v0 }
 0x13e   : > { %v724_v36 = vpop.permute.xlu1 %723  ;;  %v736_v62 = vpop.permute.xlu0 %735 }
 0x13f   : > { %854 = vst.msk [vmem:[%s1430_s25 + $0x98] sm:$0xff] %vm834_vm0, %v821_v25  ;;  %857 = vst.msk [vmem:[%s1430_s25 + $0xb0] sm:$0xff] %vm834_vm0, %v824_v23  ;;  %v791_v1 = vmul.f32 %v1408_v26, %v724_v36  ;;  %v794_v35 = vmul.f32 %v1408_v26, %v736_v62  ;;  %v438_v4 = vadd.f32 %v1268_v9, %v400_v19 }
 0x141   : > { %v823_v63 = vadd.f32 %v791_v1, %v1363_v47  ;;  %v826_v46 = vadd.f32 %v794_v35, %v630_v41  ;;  %v402_v47 = vmul.f32 %v1258_v5, %v1262_v7  ;;  %v634_v6 = vadd.f32 %v602_v53, %v438_v4 }
 0x142   : > { %v732_v21 = vpop.permute.xlu1 %731  ;;  %v744_v32 = vpop.permute.xlu0 %743 }
 0x143   : > { %856 = vst.msk [vmem:[%s1430_s25 + $0xa8] sm:$0xff] %vm834_vm0, %v823_v63  ;;  %859 = vst.msk [vmem:[%s1430_s25 + $0xc0] sm:$0xff] %vm834_vm0, %v826_v46  ;;  %v793_v38 = vmul.f32 %v1408_v26, %v732_v21  ;;  %v796_v12 = vmul.f32 %v1408_v26, %v744_v32  ;;  %v440_v7 = vadd.f32 %v1268_v9, %v402_v47 }
 0x145   : > { %v825_v54 = vadd.f32 %v793_v38, %v1371_v39  ;;  %v828_v17 = vadd.f32 %v796_v12, %v632_v20  ;;  %v636_v27 = vadd.f32 %v604_v49, %v440_v7 }
 0x146   : > { %v740_v42 = vpop.permute.xlu1 %739  ;;  %v752_v55 = vpop.permute.xlu0 %751 }
 0x147   : > { %858 = vst.msk [vmem:[%s1430_s25 + $0xb8] sm:$0xff] %vm834_vm0, %v825_v54  ;;  %861 = vst.msk [vmem:[%s1430_s25 + $0xd0] sm:$0xff] %vm834_vm0, %v828_v17  ;;  %v795_v13 = vmul.f32 %v1408_v26, %v740_v42  ;;  %v798_v5 = vmul.f32 %v1408_v26, %v752_v55 }
 0x149   : > { %v827_v39 = vadd.f32 %v795_v13, %v1379_v14  ;;  %v830_v8 = vadd.f32 %v798_v5, %v634_v6 }
 0x14a   : > { %v748_v2 = vpop.permute.xlu1 %747  ;;  %v760_v48 = vpop.permute.xlu0 %759 }
 0x14b   : > { %860 = vst.msk [vmem:[%s1430_s25 + $0xc8] sm:$0xff] %vm834_vm0, %v827_v39  ;;  %863 = vst.msk [vmem:[%s1430_s25 + $0xe0] sm:$0xff] %vm834_vm0, %v830_v8  ;;  %v797_v15 = vmul.f32 %v1408_v26, %v748_v2  ;;  %v800_v11 = vmul.f32 %v1408_v26, %v760_v48 }
 0x14d   : > { %v829_v56 = vadd.f32 %v797_v15, %v1387_v30  ;;  %v832_v24 = vadd.f32 %v800_v11, %v636_v27 }
 0x14e   : > { %v756_v9 = vpop.permute.xlu1 %755 }
 0x14f   : > { %862 = vst.msk [vmem:[%s1430_s25 + $0xd8] sm:$0xff] %vm834_vm0, %v829_v56  ;;  %865 = vst.msk [vmem:[%s1430_s25 + $0xf0] sm:$0xff] %vm834_vm0, %v832_v24  ;;  %v799_v14 = vmul.f32 %v1408_v26, %v756_v9 }
 0x151   : > { %v831_v43 = vadd.f32 %v799_v14, %v1396_v51 }
 0x152   : > { %v764_v34 = vpop.permute.xlu1 %763 }
 0x153   : > { %864 = vst.msk [vmem:[%s1430_s25 + $0xe8] sm:$0xff] %vm834_vm0, %v831_v43  ;;  %v801_v28 = vmul.f32 %v1408_v26, %v764_v34 }
 0x155   : > { %v833_v57 = vadd.f32 %v801_v28, %v1414_v37 }
 0x157   : > { %866 = vst.msk [vmem:[%s1430_s25 + $0xf8] sm:$0xff] %vm834_vm0, %v833_v57 }
 0x158 PF: > { %s13_s12 = sadd.s32 1, %s958_s12  }
 0x159   : > { %p10_p4 = scmp.ge.s32.totalorder %s13_s12, 4  }
 0x15b   :  { %12 = sbr.rel (!%p10_p4) target bundleno = 1 (0x1), region = 62 }

</bundles_post_ra>
